<compile_context>
chip_gen: v5e
topology: v5e:2x2
jax: 0.10.0
libtpu: 0.0.40
codegen_flags: <defaults>
</compile_context>

<pallas_src>
import jax
import jax.numpy as jnp
from jax.experimental import pallas as pl
from jax.experimental.pallas import tpu as pltpu


def _ffn_kernel(x_ref, w1_ref, b1_ref, w2_ref, b2g_ref, g_ref, o_ref):
    """Fused MobileBERT FFN: NoNorm(ReLU(x@W1+b1) @ W2 + b2 + x).

    b2g_ref holds the precomputed (b2 * gamma + beta) row (folded NoNorm).
    """
    x = x_ref[...]                                        # (tm, E) f32 residual
    # First GEMM: bf16 operands on the MXU, f32 accumulation.
    h = jnp.dot(x.astype(jnp.bfloat16), w1_ref[...],
                preferred_element_type=jnp.float32)       # (tm, I)
    h = jnp.maximum(h + b1_ref[...], 0.0)
    # Second GEMM: bf16 operands, f32 accumulation.
    y = jnp.dot(h.astype(jnp.bfloat16), w2_ref[...],
                preferred_element_type=jnp.float32)       # (tm, E)
    # Residual + folded NoNorm epilogue, all in f32.
    o_ref[...] = ((y + x) * g_ref[...] + b2g_ref[...]).astype(o_ref.dtype)


def _round_up(n, m):
    return (n + m - 1) // m * m


def _is_v7x():
    # Only used to decide whether forcing >= 2 grid steps pays (2 TCs/chip).
    try:
        kind = jax.devices()[0].device_kind.lower()
        return ("v7" in kind) or ("7x" in kind)
    except Exception:
        return False


def _pallas_ffn(x2, w1_bf, b1_2, w2_bf, b2g_2, g_2, *, tm):
    M, E = x2.shape
    I = w1_bf.shape[1]
    n_steps = M // tm

    def const_spec(shape):
        # Grid-invariant blocks: weights, biases, NoNorm params.
        return pl.BlockSpec(shape, lambda i: (0,) * len(shape))

    cost = pl.CostEstimate(
        flops=4 * M * E * I,                      # two GEMMs, 2*M*E*I each
        transcendentals=0,
        bytes_accessed=(M * E * 4 * 2             # x read + out write (f32)
                        + 2 * E * I * 2           # W1 + W2 (bf16)
                        + (I + 3 * E) * 4),       # b1, b2*g+beta, gamma (f32)
    )

    return pl.pallas_call(
        _ffn_kernel,
        out_shape=jax.ShapeDtypeStruct((M, E), x2.dtype),
        grid_spec=pltpu.PrefetchScalarGridSpec(
            num_scalar_prefetch=0,
            grid=(n_steps,),
            in_specs=[
                pl.BlockSpec((tm, E), lambda i: (i, 0)),   # x rows (streamed)
                const_spec((E, I)),                        # W1 (resident, bf16)
                const_spec((1, I)),                        # b1 (f32)
                const_spec((I, E)),                        # W2 (resident, bf16)
                const_spec((1, E)),                        # b2*gamma + beta (f32)
                const_spec((1, E)),                        # gamma (f32)
            ],
            out_specs=pl.BlockSpec((tm, E), lambda i: (i, 0)),
        ),
        compiler_params=pltpu.CompilerParams(
            dimension_semantics=("parallel",),
        ),
        cost_estimate=cost,
    )(x2, w1_bf, b1_2, w2_bf, b2g_2, g_2)


def ffn_layer(x, w1, b1, w2, b2, gamma, beta, *, tm_max=512):
    """MobileBERT FFNLayer forward.

    x:  (B, S, E) float32
    w1: (E, I), b1: (I,)   -- MobileBertIntermediate dense (stored [in, out])
    w2: (I, E), b2: (E,)   -- FFNOutput dense (stored [in, out])
    gamma, beta: (E,)      -- NoNorm weight / bias
    """
    B, S, E = x.shape
    I = w1.shape[1]
    M = B * S

    # Pick the number of grid steps first, then the tile size, so padding is
    # at most a handful of rows (instead of up to tm-1).
    n_steps = pl.cdiv(M, tm_max)
    if n_steps == 1 and M >= 512 and _is_v7x():
        # v7x only: shard rows over both TensorCores, each half still a full
        # MXU-sized tile. v5e/v6e (single TC) keep a single grid step.
        n_steps = 2
    tm = _round_up(pl.cdiv(M, n_steps), 8)
    M_pad = n_steps * tm

    x2 = x.reshape(M, E)
    if M_pad != M:
        # Mask-free tail handling: pad rows with zeros, slice them off after.
        x2 = jnp.pad(x2, ((0, M_pad - M), (0, 0)))

    # bf16 weights for the MXU; activations are cast in-kernel, residual and
    # epilogue stay in f32.
    w1_bf = w1.astype(jnp.bfloat16)
    w2_bf = w2.astype(jnp.bfloat16)
    b1_2 = b1.reshape(1, I).astype(jnp.float32)
    g_2 = gamma.reshape(1, E).astype(jnp.float32)
    # Fold the output bias into the NoNorm affine: b2*gamma + beta.
    b2g_2 = (b2 * gamma + beta).reshape(1, E).astype(jnp.float32)

    out2 = _pallas_ffn(x2, w1_bf, b1_2, w2_bf, b2g_2, g_2, tm=tm)

    if M_pad != M:
        out2 = out2[:M]
    return out2.reshape(B, S, E)


if __name__ == "__main__":
    # Module defaults: emb_dim=128, intermediate_size=512.
    B, S, E, I = 2, 8, 128, 512
    key = jax.random.PRNGKey(0)
    kx, k1, kb1, k2, kb2, kg, kbeta = jax.random.split(key, 7)

    x = jax.random.normal(kx, (B, S, E), dtype=jnp.float32)
    # Torch-Linear-ish scales; weights stored as [in, out] (transposed vs torch).
    w1 = jax.random.normal(k1, (E, I), dtype=jnp.float32) * (1.0 / jnp.sqrt(E))
    b1 = jax.random.normal(kb1, (I,), dtype=jnp.float32) * 0.02
    w2 = jax.random.normal(k2, (I, E), dtype=jnp.float32) * (1.0 / jnp.sqrt(I))
    b2 = jax.random.normal(kb2, (E,), dtype=jnp.float32) * 0.02
    # NoNorm params (non-trivial to exercise the folded epilogue).
    gamma = 1.0 + 0.1 * jax.random.normal(kg, (E,), dtype=jnp.float32)
    beta = 0.1 * jax.random.normal(kbeta, (E,), dtype=jnp.float32)

    out = ffn_layer(x, w1, b1, w2, b2, gamma, beta)
    out = jax.block_until_ready(out)
    assert out.shape == (B, S, E)

    hp = jax.lax.Precision.HIGHEST

    # Reference 1: emulate the kernel's bf16-operand / f32-accumulate matmuls.
    xb = x.astype(jnp.bfloat16).astype(jnp.float32)
    w1e = w1.astype(jnp.bfloat16).astype(jnp.float32)
    w2e = w2.astype(jnp.bfloat16).astype(jnp.float32)
    h_e = jnp.maximum(jnp.einsum("bse,ei->bsi", xb, w1e, precision=hp) + b1, 0.0)
    hb = h_e.astype(jnp.bfloat16).astype(jnp.float32)
    y_e = jnp.einsum("bsi,ie->bse", hb, w2e, precision=hp) + b2 + x
    ref_bf = y_e * gamma + beta
    assert jnp.allclose(out, ref_bf, atol=2e-3, rtol=2e-3), (
        "bf16-emulated mismatch, max abs err = %e"
        % float(jnp.max(jnp.abs(out - ref_bf))))

    # Reference 2: pure f32 module semantics (loose tolerance: bf16 MXU operands).
    h32 = jnp.maximum(jnp.einsum("bse,ei->bsi", x, w1, precision=hp) + b1, 0.0)
    y32 = jnp.einsum("bsi,ie->bse", h32, w2, precision=hp) + b2 + x
    ref32 = y32 * gamma + beta
    assert jnp.allclose(out, ref32, atol=5e-2, rtol=5e-2), (
        "f32 reference mismatch, max abs err = %e"
        % float(jnp.max(jnp.abs(out - ref32))))

    # Also exercise a ragged / multi-step row count to validate the new
    # step-count-first tiling (padding <= a few rows, sliced off correctly).
    B2, S2 = 5, 123                                  # M = 615 -> 2 grid steps
    x_big = jax.random.normal(kx, (B2, S2, E), dtype=jnp.float32)
    out_big = jax.block_until_ready(
        ffn_layer(x_big, w1, b1, w2, b2, gamma, beta))
    h_big = jnp.maximum(
        jnp.einsum("bse,ei->bsi", x_big, w1, precision=hp) + b1, 0.0)
    ref_big = (jnp.einsum("bsi,ie->bse", h_big, w2, precision=hp)
               + b2 + x_big) * gamma + beta
    assert out_big.shape == (B2, S2, E)
    assert jnp.allclose(out_big, ref_big, atol=5e-2, rtol=5e-2), (
        "ragged-M mismatch, max abs err = %e"
        % float(jnp.max(jnp.abs(out_big - ref_big))))

    print("KERNEL_OK")
</pallas_src>

<mosaic_0001>
module attributes {stable_mosaic.version = 11 : i64} {
  func.func @_ffn_kernel(%arg0: i32, %arg1: memref<16x128xf32, #tpu.memory_space<vmem>>, %arg2: memref<128x512xbf16, #tpu.memory_space<vmem>>, %arg3: memref<1x512xf32, #tpu.memory_space<vmem>>, %arg4: memref<512x128xbf16, #tpu.memory_space<vmem>>, %arg5: memref<1x128xf32, #tpu.memory_space<vmem>>, %arg6: memref<1x128xf32, #tpu.memory_space<vmem>>, %arg7: memref<16x128xf32, #tpu.memory_space<vmem>>) attributes {dimension_semantics = [#tpu.dimension_semantics<parallel>], iteration_bounds = array<i64: 1>, scalar_prefetch = 0 : i64, scratch_operands = 0 : i64, tpu.core_type = #tpu.core_type<tc>, window_params = [{transform_indices = @transform_0, window_bounds = array<i64: 16, 128>}, {pipeline_mode = #tpu.pipeline_mode<synchronous>, transform_indices = @transform_1, window_bounds = array<i64: 128, 512>}, {pipeline_mode = #tpu.pipeline_mode<synchronous>, transform_indices = @transform_2, window_bounds = array<i64: 1, 512>}, {pipeline_mode = #tpu.pipeline_mode<synchronous>, transform_indices = @transform_3, window_bounds = array<i64: 512, 128>}, {pipeline_mode = #tpu.pipeline_mode<synchronous>, transform_indices = @transform_4, window_bounds = array<i64: 1, 128>}, {pipeline_mode = #tpu.pipeline_mode<synchronous>, transform_indices = @transform_5, window_bounds = array<i64: 1, 128>}, {transform_indices = @transform_6, window_bounds = array<i64: 16, 128>}]} {
    %c0 = arith.constant 0 : index
    %c0_0 = arith.constant 0 : index
    %0 = vector.load %arg1[%c0, %c0_0] : memref<16x128xf32, #tpu.memory_space<vmem>>, vector<16x128xf32>
    %1 = arith.truncf %0 : vector<16x128xf32> to vector<16x128xbf16>
    %c0_1 = arith.constant 0 : index
    %c0_2 = arith.constant 0 : index
    %2 = vector.load %arg2[%c0_1, %c0_2] : memref<128x512xbf16, #tpu.memory_space<vmem>>, vector<128x512xbf16>
    %cst = arith.constant dense<0.000000e+00> : vector<16x512xf32>
    %3 = tpu.matmul %1, %2, %cst {dimension_numbers = #tpu.dot_dimension_numbers<[1], [0], [0], [1], [0, 0, 1, 1], [], []>} : vector<16x128xbf16>, vector<128x512xbf16>, vector<16x512xf32> -> vector<16x512xf32>
    %c0_3 = arith.constant 0 : index
    %c0_4 = arith.constant 0 : index
    %4 = vector.load %arg3[%c0_3, %c0_4] : memref<1x512xf32, #tpu.memory_space<vmem>>, vector<1x512xf32>
    %5 = vector.broadcast %4 : vector<1x512xf32> to vector<16x512xf32>
    %6 = arith.addf %3, %5 : vector<16x512xf32>
    %cst_5 = arith.constant 0.000000e+00 : f32
    %7 = vector.broadcast %cst_5 : f32 to vector<16x512xf32>
    %8 = arith.maximumf %6, %7 : vector<16x512xf32>
    %9 = arith.truncf %8 : vector<16x512xf32> to vector<16x512xbf16>
    %c0_6 = arith.constant 0 : index
    %c0_7 = arith.constant 0 : index
    %10 = vector.load %arg4[%c0_6, %c0_7] : memref<512x128xbf16, #tpu.memory_space<vmem>>, vector<512x128xbf16>
    %cst_8 = arith.constant dense<0.000000e+00> : vector<16x128xf32>
    %11 = tpu.matmul %9, %10, %cst_8 {dimension_numbers = #tpu.dot_dimension_numbers<[1], [0], [0], [1], [0, 0, 1, 1], [], []>} : vector<16x512xbf16>, vector<512x128xbf16>, vector<16x128xf32> -> vector<16x128xf32>
    %12 = arith.addf %11, %0 : vector<16x128xf32>
    %c0_9 = arith.constant 0 : index
    %c0_10 = arith.constant 0 : index
    %13 = vector.load %arg6[%c0_9, %c0_10] : memref<1x128xf32, #tpu.memory_space<vmem>>, vector<1x128xf32>
    %14 = vector.broadcast %13 : vector<1x128xf32> to vector<16x128xf32>
    %15 = arith.mulf %12, %14 : vector<16x128xf32>
    %c0_11 = arith.constant 0 : index
    %c0_12 = arith.constant 0 : index
    %16 = vector.load %arg5[%c0_11, %c0_12] : memref<1x128xf32, #tpu.memory_space<vmem>>, vector<1x128xf32>
    %17 = vector.broadcast %16 : vector<1x128xf32> to vector<16x128xf32>
    %18 = arith.addf %15, %17 : vector<16x128xf32>
    %c0_13 = arith.constant 0 : index
    %c0_14 = arith.constant 0 : index
    %19 = vector.load %arg7[%c0_13, %c0_14] : memref<16x128xf32, #tpu.memory_space<vmem>>, vector<16x128xf32>
    tpu.vector_store %arg7[%c0_13, %c0_14], %18 {strides = array<i32>} : memref<16x128xf32, #tpu.memory_space<vmem>>, vector<16x128xf32>,
    return
  }
  func.func @transform_0(%arg0: i32) -> (i32, i32) {
    %c0_i32 = arith.constant 0 : i32
    %c0_i32_0 = arith.constant 0 : i32
    return %arg0, %c0_i32 : i32, i32
  }
  func.func @transform_1(%arg0: i32) -> (i32, i32) {
    %c0_i32 = arith.constant 0 : i32
    %c0_i32_0 = arith.constant 0 : i32
    %c0_i32_1 = arith.constant 0 : i32
    return %c0_i32, %c0_i32_0 : i32, i32
  }
  func.func @transform_2(%arg0: i32) -> (i32, i32) {
    %c0_i32 = arith.constant 0 : i32
    %c0_i32_0 = arith.constant 0 : i32
    %c0_i32_1 = arith.constant 0 : i32
    return %c0_i32, %c0_i32_0 : i32, i32
  }
  func.func @transform_3(%arg0: i32) -> (i32, i32) {
    %c0_i32 = arith.constant 0 : i32
    %c0_i32_0 = arith.constant 0 : i32
    %c0_i32_1 = arith.constant 0 : i32
    return %c0_i32, %c0_i32_0 : i32, i32
  }
  func.func @transform_4(%arg0: i32) -> (i32, i32) {
    %c0_i32 = arith.constant 0 : i32
    %c0_i32_0 = arith.constant 0 : i32
    %c0_i32_1 = arith.constant 0 : i32
    return %c0_i32, %c0_i32_0 : i32, i32
  }
  func.func @transform_5(%arg0: i32) -> (i32, i32) {
    %c0_i32 = arith.constant 0 : i32
    %c0_i32_0 = arith.constant 0 : i32
    %c0_i32_1 = arith.constant 0 : i32
    return %c0_i32, %c0_i32_0 : i32, i32
  }
  func.func @transform_6(%arg0: i32) -> (i32, i32) {
    %c0_i32 = arith.constant 0 : i32
    %c0_i32_0 = arith.constant 0 : i32
    return %arg0, %c0_i32 : i32, i32
  }
}

</mosaic_0001>

<bundles_post_ra>
// kernel: tpu_custom_call.1
= control target key start
LH: loop header
LB: loop body
LE: loop exit
PB: predicated region body
PF: predicated region fallthrough
CT: control target
= control target key end

     0   :  { %11 = vsyncpa [#allocation3], 0  ;;  %s1247_s0 = inlined_call_operand.hbm [shape: f32[16,128], index: 0, kind: input, shape index: {}]   ;;  %s1248_s1 = inlined_call_operand.hbm [shape: bf16[128,512], index: 1, kind: input, shape index: {}]   ;;  %s1249_s2 = inlined_call_operand.hbm [shape: f32[1,512], index: 2, kind: input, shape index: {}]   ;;  %s1250_s3 = inlined_call_operand.hbm [shape: bf16[512,128], index: 3, kind: input, shape index: {}]   ;;  %s1251_s4 = inlined_call_operand.vmem [shape: f32[1,128], index: 4, kind: input, shape index: {}]   ;;  %s1252_s5 = inlined_call_operand.vmem [shape: f32[1,128], index: 5, kind: input, shape index: {}]   ;;  %s1253_s6 = inlined_call_operand.hbm [shape: f32[16,128], index: 6, kind: output, shape index: {}]  }
   0x1   :  { %12 = vsyncpa [#allocation6], 0 }
   0x2   :  { %13 = vsyncpa [#allocation9], 0  ;;  %s32_s23 = sshll.u32 %s1248_s1, 4  ;;  %s33_s23 = int_to_ptr.hbm [resolvable:$true] %s32_s23 }
   0x3   :  { %14 = vsyncpa [#allocation4], 0  ;;  %s1166_s24 = smov [#allocation5]   ;;  %s19_s28 = sshll.u32 %s1247_s0, 4  ;;  %s20_s28 = int_to_ptr.hbm [resolvable:$true] %s19_s28 }
   0x4   :  { %s34_s25 = sshll.u32 %s1166_s24, 4  ;;  %s1167_s29 = smov 256   ;;  %s35_s25 = int_to_ptr.vmem [resolvable:$true] %s34_s25 }
   0x5   :  { %s1168_s30 = smov 16   ;;  %s1169_s7 = smov [#allocation2]  }
   0x6   :  { %40 = dma.hbm_to_vmem [thread:$0]  %s33_s23, 4096, %s35_s25, [#allocation6], %s1167_s29, %s1167_s29, %s1168_s30  }
   0x7   :  { %s21_s8 = sshll.u32 %s1169_s7, 4  ;;  %s1170_s9 = smov 128   ;;  %s22_s8 = int_to_ptr.vmem [resolvable:$true] %s21_s8 }
   0x8   :  { %s1171_s10 = smov 8   ;;  %s46_s12 = sshll.u32 %s1249_s2, 4  ;;  %s47_s12 = int_to_ptr.hbm [resolvable:$true] %s46_s12 }
   0x9   :  { %27 = dma.hbm_to_vmem [thread:$0]  %s20_s28, 256, %s22_s8, [#allocation3], %s1170_s9, %s1170_s9, %s1171_s10  }
   0xa   :  { %s1172_s13 = smov [#allocation7]   ;;  %s56_s16 = sshll.u32 %s1250_s3, 4  ;;  %s57_s16 = int_to_ptr.hbm [resolvable:$true] %s56_s16 }
   0xb   :  { %s48_s0 = sshll.u32 %s1172_s13, 4  ;;  %s1173_s17 = smov [#allocation8]   ;;  %s49_s0 = int_to_ptr.vmem [resolvable:$true] %s48_s0 }
   0xc   :  { %51 = dma.hbm_to_vmem [thread:$0]  %s47_s12, 64, %s49_s0, [#allocation6]  }
   0xd   :  { %s58_s18 = sshll.u32 %s1173_s17, 4  ;;  %s1174_s19 = smov 64   ;;  %s59_s18 = int_to_ptr.vmem [resolvable:$true] %s58_s18 }
   0xe   :  { %s1175_s20 = smov 4  }
   0xf   :  { %64 = dma.hbm_to_vmem [thread:$0]  %s57_s16, 4096, %s59_s18, [#allocation9], %s1174_s19, %s1174_s19, %s1175_s20  }
  0x10   :  { %1158 = dma.done.wait [#allocation3], 256  }
  0x11   :  { %1159 = vsyncadd [#allocation3], 4294967040 }
  0x12   :  { %1160 = dma.done.wait [#allocation6], 4160  }
  0x13   :  { %1161 = vsyncadd [#allocation6], 4294963136 }
  0x14   :  { %1162 = dma.done.wait [#allocation9], 4096  }
  0x15   :  { %1163 = vsyncadd [#allocation9], 4294963200  ;;  %v819_v0 = vld [vmem:[#allocation5 + $0xe0] sm:$0xf]  ;;  %v991_v1 = vld [vmem:[#allocation5 + $0xec] sm:$0xf0] }
  0x16   :  { %v989_v2 = vld [vmem:[#allocation5 + $0xe4] sm:$0xf]  ;;  %v820_v3 = vor.u32 %v991_v1, %v819_v0  ;;  %v821_v4 = vld [vmem:[#allocation5 + $0xf0] sm:$0xf0]  ;;  %v827_v5 = vld [vmem:[#allocation5 + $0xe8] sm:$0xf] }
  0x17   :  { %v992_v6 = vld [vmem:[#allocation5 + $0xf4] sm:$0xf0]  ;;  %v824_v7 = vor.u32 %v989_v2, %v821_v4  ;;  %v990_v9 = vld [vmem:[#allocation5 + $0xec] sm:$0xf]  ;;  %v829_v10 = vld [vmem:[#allocation5 + $0xf8] sm:$0xf0] }
  0x18   :  { %v828_v8 = vor.u32 %v992_v6, %v827_v5  ;;  %v803_v11 = vld [vmem:[#allocation5 + $0xc0] sm:$0xf]  ;;  %290 = vmatpush.bf16.msra.mxu0 %v820_v3  ;;  %v832_v12 = vor.u32 %v990_v9, %v829_v10  ;;  %v987_v13 = vld [vmem:[#allocation5 + $0xcc] sm:$0xf0]  ;;  %v985_v14 = vld [vmem:[#allocation5 + $0xc4] sm:$0xf] }
  0x19   :  { %v805_v15 = vld [vmem:[#allocation5 + $0xd0] sm:$0xf0]  ;;  %304 = vmatpush.bf16.msra.mxu1 %v824_v7  ;;  %v804_v16 = vor.u32 %v987_v13, %v803_v11  ;;  %v811_v18 = vld [vmem:[#allocation5 + $0xc8] sm:$0xf]  ;;  %v988_v19 = vld [vmem:[#allocation5 + $0xd4] sm:$0xf0] }
  0x1a   :  { %318 = vmatpush.bf16.msra.mxu2 %v828_v8  ;;  %v808_v17 = vor.u32 %v985_v14, %v805_v15  ;;  %v986_v20 = vld [vmem:[#allocation5 + $0xcc] sm:$0xf]  ;;  %332 = vmatpush.bf16.msra.mxu3 %v832_v12  ;;  %v812_v21 = vor.u32 %v988_v19, %v811_v18  ;;  %v813_v22 = vld [vmem:[#allocation5 + $0xd8] sm:$0xf0]  ;;  %v787_v23 = vld [vmem:[#allocation5 + $0xa0] sm:$0xf] }
  0x1b   :  { %v983_v24 = vld [vmem:[#allocation5 + $0xac] sm:$0xf0]  ;;  %v816_v25 = vor.u32 %v986_v20, %v813_v22  ;;  %v981_v26 = vld [vmem:[#allocation5 + $0xa4] sm:$0xf]  ;;  %v789_v27 = vld [vmem:[#allocation5 + $0xb0] sm:$0xf0] }
  0x1c   :  { %v795_v28 = vld [vmem:[#allocation5 + $0xa8] sm:$0xf]  ;;  %291 = vmatpush.bf16.msra.mxu0 %v804_v16  ;;  %v788_v29 = vor.u32 %v983_v24, %v787_v23  ;;  %v984_v30 = vld [vmem:[#allocation5 + $0xb4] sm:$0xf0]  ;;  %v982_v31 = vld [vmem:[#allocation5 + $0xac] sm:$0xf]  ;;  %v792_v33 = vor.u32 %v981_v26, %v789_v27 }
  0x1d   :  { %v797_v32 = vld [vmem:[#allocation5 + $0xb8] sm:$0xf0]  ;;  %305 = vmatpush.bf16.msra.mxu1 %v808_v17  ;;  %v796_v34 = vor.u32 %v984_v30, %v795_v28  ;;  %v771_v35 = vld [vmem:[#allocation5 + $0x80] sm:$0xf]  ;;  %v979_v36 = vld [vmem:[#allocation5 + $0x8c] sm:$0xf0] }
  0x1e   :  { %319 = vmatpush.bf16.msra.mxu2 %v812_v21  ;;  %v977_v37 = vld [vmem:[#allocation5 + $0x84] sm:$0xf]  ;;  %333 = vmatpush.bf16.msra.mxu3 %v816_v25  ;;  %v800_v38 = vor.u32 %v982_v31, %v797_v32  ;;  %v773_v39 = vld [vmem:[#allocation5 + $0x90] sm:$0xf0]  ;;  %v779_v40 = vld [vmem:[#allocation5 + $0x88] sm:$0xf]  ;;  %v772_v44 = vor.u32 %v979_v36, %v771_v35 }
  0x1f   :  { %v980_v41 = vld [vmem:[#allocation5 + $0x94] sm:$0xf0]  ;;  %v978_v42 = vld [vmem:[#allocation5 + $0x8c] sm:$0xf]  ;;  %v781_v43 = vld [vmem:[#allocation5 + $0x98] sm:$0xf0]  ;;  %v776_v45 = vor.u32 %v977_v37, %v773_v39 }
  0x20   :  { %292 = vmatpush.bf16.msra.mxu0 %v788_v29  ;;  %v780_v46 = vor.u32 %v980_v41, %v779_v40  ;;  %v755_v47 = vld [vmem:[#allocation5 + $0x60] sm:$0xf]  ;;  %v975_v48 = vld [vmem:[#allocation5 + $0x6c] sm:$0xf0]  ;;  %v973_v49 = vld [vmem:[#allocation5 + $0x64] sm:$0xf]  ;;  %v784_v50 = vor.u32 %v978_v42, %v781_v43 }
  0x21   :  { %306 = vmatpush.bf16.msra.mxu1 %v792_v33  ;;  %v757_v51 = vld [vmem:[#allocation5 + $0x70] sm:$0xf0]  ;;  %v763_v52 = vld [vmem:[#allocation5 + $0x68] sm:$0xf]  ;;  %v976_v53 = vld [vmem:[#allocation5 + $0x74] sm:$0xf0]  ;;  %v756_v56 = vor.u32 %v975_v48, %v755_v47 }
  0x22   :  { %320 = vmatpush.bf16.msra.mxu2 %v796_v34  ;;  %334 = vmatpush.bf16.msra.mxu3 %v800_v38  ;;  %v974_v54 = vld [vmem:[#allocation5 + $0x6c] sm:$0xf]  ;;  %v765_v55 = vld [vmem:[#allocation5 + $0x78] sm:$0xf0]  ;;  %v760_v57 = vor.u32 %v973_v49, %v757_v51  ;;  %v764_v58 = vor.u32 %v976_v53, %v763_v52  ;;  %v739_v59 = vld [vmem:[#allocation5 + $0x40] sm:$0xf] }
  0x23   :  { %v971_v60 = vld [vmem:[#allocation5 + $0x4c] sm:$0xf0]  ;;  %v969_v61 = vld [vmem:[#allocation5 + $0x44] sm:$0xf]  ;;  %v768_v62 = vor.u32 %v974_v54, %v765_v55  ;;  %v741_v63 = vld [vmem:[#allocation5 + $0x50] sm:$0xf0] }
  0x24   :  { %293 = vmatpush.bf16.msra.mxu0 %v772_v44  ;;  %v747_v0 = vld [vmem:[#allocation5 + $0x48] sm:$0xf]  ;;  %v972_v1 = vld [vmem:[#allocation5 + $0x54] sm:$0xf0]  ;;  %v970_v2 = vld [vmem:[#allocation5 + $0x4c] sm:$0xf]  ;;  %v740_v4 = vor.u32 %v971_v60, %v739_v59  ;;  %v744_v5 = vor.u32 %v969_v61, %v741_v63 }
  0x25   :  { %307 = vmatpush.bf16.msra.mxu1 %v776_v45  ;;  %v749_v3 = vld [vmem:[#allocation5 + $0x58] sm:$0xf0]  ;;  %v748_v6 = vor.u32 %v972_v1, %v747_v0  ;;  %v723_v7 = vld [vmem:[#allocation5 + $0x20] sm:$0xf]  ;;  %v967_v8 = vld [vmem:[#allocation5 + $0x2c] sm:$0xf0] }
  0x26   :  { %321 = vmatpush.bf16.msra.mxu2 %v780_v46  ;;  %335 = vmatpush.bf16.msra.mxu3 %v784_v50  ;;  %v965_v9 = vld [vmem:[#allocation5 + $0x24] sm:$0xf]  ;;  %v752_v10 = vor.u32 %v970_v2, %v749_v3  ;;  %v725_v11 = vld [vmem:[#allocation5 + $0x30] sm:$0xf0]  ;;  %v731_v12 = vld [vmem:[#allocation5 + $0x28] sm:$0xf]  ;;  %v724_v16 = vor.u32 %v967_v8, %v723_v7 }
  0x27   :  { %v968_v13 = vld [vmem:[#allocation5 + $0x34] sm:$0xf0]  ;;  %v966_v14 = vld [vmem:[#allocation5 + $0x2c] sm:$0xf]  ;;  %v733_v15 = vld [vmem:[#allocation5 + $0x38] sm:$0xf0]  ;;  %v728_v17 = vor.u32 %v965_v9, %v725_v11 }
  0x28   :  { %294 = vmatpush.bf16.msra.mxu0 %v756_v56  ;;  %v732_v18 = vor.u32 %v968_v13, %v731_v12  ;;  %v707_v19 = vld [vmem:[#allocation5] sm:$0xf]  ;;  %v963_v20 = vld [vmem:[#allocation5 + $0xc] sm:$0xf0]  ;;  %v961_v21 = vld [vmem:[#allocation5 + $0x4] sm:$0xf]  ;;  %v736_v22 = vor.u32 %v966_v14, %v733_v15 }
  0x29   :  { %308 = vmatpush.bf16.msra.mxu1 %v760_v57  ;;  %v709_v23 = vld [vmem:[#allocation5 + $0x10] sm:$0xf0]  ;;  %v715_v24 = vld [vmem:[#allocation5 + $0x8] sm:$0xf]  ;;  %v964_v25 = vld [vmem:[#allocation5 + $0x14] sm:$0xf0]  ;;  %v708_v29 = vor.u32 %v963_v20, %v707_v19 }
  0x2a   :  { %322 = vmatpush.bf16.msra.mxu2 %v764_v58  ;;  %336 = vmatpush.bf16.msra.mxu3 %v768_v62  ;;  %v962_v26 = vld [vmem:[#allocation5 + $0xc] sm:$0xf]  ;;  %v717_v27 = vld [vmem:[#allocation5 + $0x18] sm:$0xf0]  ;;  %v1227_v28 = vld [vmem:[#allocation2] sm:$0xff]  ;;  %v712_v31 = vor.u32 %v961_v21, %v709_v23  ;;  %v716_v32 = vor.u32 %v964_v25, %v715_v24  ;;  %s1176_s23 = smov [#allocation10]  }
  0x2b   :  { %v1229_v30 = vld [vmem:[#allocation2 + $0x8] sm:$0xff]  ;;  %v720_v33 = vor.u32 %v962_v26, %v717_v27  ;;  %v998_v42 = vld [vmem:[#allocation8 + $0x28] sm:$0xff]  ;;  %v997_v46 = vld [vmem:[#allocation8 + $0x20] sm:$0xff]  ;;  %s688_s24 = sshll.u32 %s1176_s23, 4  ;;  %s690_s26 = sshll.u32 %s1253_s6, 4  ;;  %s689_s24 = int_to_ptr.vmem [resolvable:$true] %s688_s24  ;;  %s691_s26 = int_to_ptr.hbm [resolvable:$true] %s690_s26 }
  0x2c   :  { %295 = vmatpush.bf16.msra.mxu0 %v740_v4  ;;  %v1000_v34 = vld [vmem:[#allocation8 + $0x38] sm:$0xff]  ;;  %v87_v35 = vpack.c.bf16 %v1229_v30, %v1227_v28  ;;  %v999_v38 = vld [vmem:[#allocation8 + $0x30] sm:$0xff]  ;;  %v1006_v44 = vld [vmem:[#allocation8 + $0x68] sm:$0xff] }
  0x2d   :  { %309 = vmatpush.bf16.msra.mxu1 %v744_v5  ;;  %v1008_v36 = vld [vmem:[#allocation8 + $0x78] sm:$0xff]  ;;  %v1007_v40 = vld [vmem:[#allocation8 + $0x70] sm:$0xff]  ;;  %v1014_v45 = vld [vmem:[#allocation8 + $0xa8] sm:$0xff] }
  0x2e   :  { %323 = vmatpush.bf16.msra.mxu2 %v748_v6  ;;  %337 = vmatpush.bf16.msra.mxu3 %v752_v10  ;;  %v1016_v37 = vld [vmem:[#allocation8 + $0xb8] sm:$0xff]  ;;  %v1015_v41 = vld [vmem:[#allocation8 + $0xb0] sm:$0xff]  ;;  %v1022_v47 = vld [vmem:[#allocation8 + $0xe8] sm:$0xff] }
  0x2f   :  { %v1024_v39 = vld [vmem:[#allocation8 + $0xf8] sm:$0xff]  ;;  %v1023_v43 = vld [vmem:[#allocation8 + $0xf0] sm:$0xff]  ;;  %v1005_v48 = vld [vmem:[#allocation8 + $0x60] sm:$0xff] }
  0x30   :  { %296 = vmatpush.bf16.msra.mxu0 %v724_v16  ;;  %v996_v49 = vld [vmem:[#allocation8 + $0x18] sm:$0xff]  ;;  %v1013_v51 = vld [vmem:[#allocation8 + $0xa0] sm:$0xff]  ;;  %v995_v53 = vld [vmem:[#allocation8 + $0x10] sm:$0xff] }
  0x31   :  { %310 = vmatpush.bf16.msra.mxu1 %v728_v17  ;;  %v1004_v50 = vld [vmem:[#allocation8 + $0x58] sm:$0xff]  ;;  %v1021_v52 = vld [vmem:[#allocation8 + $0xe0] sm:$0xff]  ;;  %v1003_v54 = vld [vmem:[#allocation8 + $0x50] sm:$0xff] }
  0x32   :  { %324 = vmatpush.bf16.msra.mxu2 %v732_v18  ;;  %338 = vmatpush.bf16.msra.mxu3 %v736_v22  ;;  %v1012_v55 = vld [vmem:[#allocation8 + $0x98] sm:$0xff]  ;;  %v994_v57 = vld [vmem:[#allocation8 + $0x8] sm:$0xff]  ;;  %v1011_v59 = vld [vmem:[#allocation8 + $0x90] sm:$0xff] }
  0x33   :  { %v1020_v56 = vld [vmem:[#allocation8 + $0xd8] sm:$0xff]  ;;  %v1002_v58 = vld [vmem:[#allocation8 + $0x48] sm:$0xff]  ;;  %v1019_v60 = vld [vmem:[#allocation8 + $0xd0] sm:$0xff] }
  0x34   :  { %297 = vmatpush.bf16.msra.mxu0 %v708_v29  ;;  %v993_v61 = vld [vmem:[#allocation8] sm:$0xff]  ;;  %v1010_v63 = vld [vmem:[#allocation8 + $0x88] sm:$0xff]  ;;  %v120_v3 = vld [vmem:[#allocation7] sm:$0xf] }
  0x35   :  { %311 = vmatpush.bf16.msra.mxu1 %v712_v31  ;;  %v1001_v62 = vld [vmem:[#allocation8 + $0x40] sm:$0xff]  ;;  %v1018_v0 = vld [vmem:[#allocation8 + $0xc8] sm:$0xff]  ;;  %v122_v5 = vperm.slane %v120_v3, 0  ;;  %v123_v7 = vperm.slane %v120_v3, 1  ;;  %v124_v17 = vperm.slane %v120_v3, 2  ;;  %v125_v19 = vperm.slane %v120_v3, 3 }
  0x36   :  { %325 = vmatpush.bf16.msra.mxu2 %v716_v32  ;;  %339 = vmatpush.bf16.msra.mxu3 %v720_v33  ;;  %v1009_v1 = vld [vmem:[#allocation8 + $0x80] sm:$0xff] }
  0x37   :  { %298 = vmatmul.bf16.vlgmr.msra.gmra.mxu0 %v87_v35  ;;  %v1017_v2 = vld [vmem:[#allocation8 + $0xc0] sm:$0xff] }
  0x38   :  { %614 = vmatpush.bf16.msrb.mxu0 %v1000_v34  ;;  %312 = vmatmul.bf16.vlgmr.msra.gmra.mxu1 %v87_v35 }
  0x39   :  { %628 = vmatpush.bf16.msrb.mxu1 %v1008_v36  ;;  %326 = vmatmul.bf16.vlgmr.msra.gmra.mxu2 %v87_v35 }
  0x3a   :  { %340 = vmatmul.bf16.vlgmr.msra.gmra.mxu3 %v87_v35  ;;  %642 = vmatpush.bf16.msrb.mxu2 %v1016_v37 }
  0x3b   :  { %656 = vmatpush.bf16.msrb.mxu3 %v1024_v39 }
  0x3c   :  { %615 = vmatpush.bf16.msrb.mxu0 %v999_v38 }
  0x3d   :  { %629 = vmatpush.bf16.msrb.mxu1 %v1007_v40 }
  0x3e   :  { %643 = vmatpush.bf16.msrb.mxu2 %v1015_v41 }
  0x3f   :  { %657 = vmatpush.bf16.msrb.mxu3 %v1023_v43 }
  0x40   :  { %616 = vmatpush.bf16.msrb.mxu0 %v998_v42 }
  0x41   :  { %630 = vmatpush.bf16.msrb.mxu1 %v1006_v44 }
  0x42   :  { %644 = vmatpush.bf16.msrb.mxu2 %v1014_v45 }
  0x43   :  { %658 = vmatpush.bf16.msrb.mxu3 %v1022_v47 }
  0x44   :  { %617 = vmatpush.bf16.msrb.mxu0 %v997_v46  ;;  %v1036_v46 = vld [vmem:[%s1252_s5] ss:$0 sm:$0xff] }
  0x45   :  { %631 = vmatpush.bf16.msrb.mxu1 %v1005_v48 }
  0x46   :  { %645 = vmatpush.bf16.msrb.mxu2 %v1013_v51 }
  0x47   :  { %659 = vmatpush.bf16.msrb.mxu3 %v1021_v52 }
  0x48   :  { %618 = vmatpush.bf16.msrb.mxu0 %v996_v49  ;;  %v1037_v49 = vld [vmem:[%s1251_s4] ss:$0 sm:$0xff] }
  0x49   :  { %632 = vmatpush.bf16.msrb.mxu1 %v1004_v50 }
  0x4a   :  { %646 = vmatpush.bf16.msrb.mxu2 %v1012_v55 }
  0x4b   :  { %660 = vmatpush.bf16.msrb.mxu3 %v1020_v56 }
  0x4c   :  { %619 = vmatpush.bf16.msrb.mxu0 %v995_v53 }
  0x4d   :  { %633 = vmatpush.bf16.msrb.mxu1 %v1003_v54 }
  0x4e   :  { %647 = vmatpush.bf16.msrb.mxu2 %v1011_v59 }
  0x4f   :  { %661 = vmatpush.bf16.msrb.mxu3 %v1019_v60 }
  0x50   :  { %620 = vmatpush.bf16.msrb.mxu0 %v994_v57 }
  0x51   :  { %634 = vmatpush.bf16.msrb.mxu1 %v1002_v58 }
  0x52   :  { %648 = vmatpush.bf16.msrb.mxu2 %v1010_v63 }
  0x53   :  { %662 = vmatpush.bf16.msrb.mxu3 %v1018_v0 }
  0x54   :  { %621 = vmatpush.bf16.msrb.mxu0 %v993_v61 }
  0x55   :  { %635 = vmatpush.bf16.msrb.mxu1 %v1001_v62 }
  0x56   :  { %649 = vmatpush.bf16.msrb.mxu2 %v1009_v1 }
  0x57   :  { %663 = vmatpush.bf16.msrb.mxu3 %v1017_v2 }
  0xb4   :  { %v299_v4 = vpop.f32.mrf.mxu0 }
  0xb5   :  { %v313_v6 = vpop.f32.mrf.mxu1  ;;  %v300_v8 = vadd.f32 %v299_v4, %v122_v5 }
  0xb6   :  { %v314_v9 = vadd.f32 %v313_v6, %v123_v7 }
  0xb7   :  { %v346_v13 = vmax.f32 %v300_v8, 0.0 }
  0xb8   :  { %v347_v16 = vmax.f32 %v314_v9, 0.0 }
  0xbc   :  { %v327_v10 = vpop.f32.mrf.mxu2  ;;  %v301_v12 = vpop.f32.mrf.mxu0 }
  0xbd   :  { %v341_v11 = vpop.f32.mrf.mxu3  ;;  %v302_v14 = vadd.f32 %v301_v12, %v122_v5  ;;  %v315_v15 = vpop.f32.mrf.mxu1  ;;  %v328_v23 = vadd.f32 %v327_v10, %v124_v17 }
  0xbe   :  { %v316_v18 = vadd.f32 %v315_v15, %v123_v7  ;;  %v342_v25 = vadd.f32 %v341_v11, %v125_v19 }
  0xbf   :  { %v350_v20 = vmax.f32 %v302_v14, 0.0  ;;  %v348_v32 = vmax.f32 %v328_v23, 0.0 }
  0xc0   :  { %v351_v21 = vmax.f32 %v316_v18, 0.0  ;;  %v349_v34 = vmax.f32 %v342_v25, 0.0 }
  0xc1   :  { %v354_v22 = vpack.c.bf16 %v350_v20, %v346_v13 }
  0xc2   :  { %v355_v24 = vpack.c.bf16 %v351_v21, %v347_v16 }
  0xc3   :  { %622 = vmatmul.bf16.vlgmr.msrb.gmra.mxu0 %v354_v22 }
  0xc4   :  { %v329_v26 = vpop.f32.mrf.mxu2  ;;  %636 = vmatmul.bf16.vlgmr.msrb.gmra.mxu1 %v355_v24 }
  0xc5   :  { %v330_v27 = vadd.f32 %v329_v26, %v124_v17  ;;  %v343_v29 = vpop.f32.mrf.mxu3 }
  0xc6   :  { %v344_v31 = vadd.f32 %v343_v29, %v125_v19 }
  0xc7   :  { %v352_v33 = vmax.f32 %v330_v27, 0.0 }
  0xc8   :  { %v353_v35 = vmax.f32 %v344_v31, 0.0 }
  0xc9   :  { %v356_v36 = vpack.c.bf16 %v352_v33, %v348_v32 }
  0xca   :  { %v357_v37 = vpack.c.bf16 %v353_v35, %v349_v34 }
  0xcb   :  { %650 = vmatmul.bf16.vlgmr.msrb.gmra.mxu2 %v356_v36 }
  0xcc   :  { %664 = vmatmul.bf16.vlgmr.msrb.gmra.mxu3 %v357_v37 }
 0x140   :  { %v623_v38 = vpop.f32.mrf.mxu0 }
 0x141   :  { %v624_v39 = vadd.f32 %v623_v38, %v1227_v28  ;;  %v637_v40 = vpop.f32.mrf.mxu1 }
 0x143   :  { %v638_v41 = vadd.f32 %v637_v40, %v624_v39 }
 0x148   :  { %v625_v42 = vpop.f32.mrf.mxu0 }
 0x149   :  { %v626_v47 = vadd.f32 %v625_v42, %v1229_v30  ;;  %v639_v51 = vpop.f32.mrf.mxu1 }
 0x14b   :  { %v640_v28 = vadd.f32 %v639_v51, %v626_v47 }
 0x14e   :  { %v651_v43 = vpop.f32.mrf.mxu2 }
 0x14f   :  { %v652_v44 = vadd.f32 %v651_v43, %v638_v41  ;;  %v665_v45 = vpop.f32.mrf.mxu3 }
 0x151   :  { %v666_v48 = vadd.f32 %v665_v45, %v652_v44 }
 0x153   :  { %v674_v50 = vmul.f32 %v1036_v46, %v666_v48 }
 0x155   :  { %v680_v52 = vadd.f32 %v1037_v49, %v674_v50 }
 0x156   :  { %v653_v53 = vpop.f32.mrf.mxu2 }
 0x157   :  { %682 = vst [vmem:[#allocation10] sm:$0xff] %v680_v52  ;;  %v654_v54 = vadd.f32 %v653_v53, %v640_v28  ;;  %v667_v55 = vpop.f32.mrf.mxu3 }
 0x159   :  { %v668_v56 = vadd.f32 %v667_v55, %v654_v54 }
 0x15b   :  { %v675_v30 = vmul.f32 %v1036_v46, %v668_v56 }
 0x15d   :  { %v681_v57 = vadd.f32 %v1037_v49, %v675_v30 }
 0x15f   :  { %683 = vst [vmem:[#allocation10 + $0x8] sm:$0xff] %v681_v57 }
 0x160   :  { %696 = dma.vmem_to_hbm [thread:$0]  %s689_s24, 256, %s691_s26, [#allocation4], %s1170_s9, %s1170_s9, %s1171_s10  }
 0x161   :  { %1164 = dma.done.wait [#allocation4], 256  }
 0x162   :  { %1165 = vsyncadd [#allocation4], 4294967040 }
 0x163   :  { %701 = vsyncpa [#allocation3], 1 }
 0x164   :  { %702 = vsyncpa [#allocation6], 1 }
 0x165   :  { %703 = vsyncpa [#allocation9], 1 }
 0x166   :  { %704 = vsyncpa [#allocation4], 1 }

</bundles_post_ra>
